<compile_context>
chip_gen: v7x
topology: tpu7x:2x2x1
jax: 0.10.0
libtpu: 0.0.40
codegen_flags: <defaults>
</compile_context>

<pallas_src>
import functools

import jax
import jax.numpy as jnp
from jax.experimental import pallas as pl
from jax.experimental.pallas import tpu as pltpu


def _round_up(v, m):
    return ((v + m - 1) // m) * m


def _cdiv(a, b):
    return (a + b - 1) // b


def _radon_backward_kernel(xs_ref, ys_ref, ca_ref, sa_ref, kb_ref, off_ref,
                           sino_ref, out_ref, *, block_q, sino_resident):
    """One grid step = (BC tile, pixel tile, angle tile).

    xs_ref, ys_ref : (1, TILE_PIX)   centered pixel coordinates (x right, y up)
    ca_ref, sa_ref : (TILE_K, 1)     cos(theta)/dp, sin(theta)/dp per angle
    kb_ref         : (TILE_K, 1)     0 for real angles, -1e9 for K padding
    off_ref        : (P_pad, 1)      positions/dp, +1e9 for P padding
    sino_ref       : (BC_TILE, BLOCK_Q) or (BC_TILE, KQ_pad) if resident
    out_ref        : (BC_TILE, TILE_PIX) f32, accumulated in place across ki
    """
    ki = pl.program_id(2)

    @pl.when(ki == 0)
    def _():
        out_ref[...] = jnp.zeros_like(out_ref)

    x = xs_ref[...]            # (1, TILE_PIX)
    y = ys_ref[...]            # (1, TILE_PIX)
    ca = ca_ref[...]           # (TILE_K, 1)
    sa = sa_ref[...]           # (TILE_K, 1)
    kb = kb_ref[...]           # (TILE_K, 1)
    off = off_ref[...]         # (P_pad, 1)

    # Separable tent weights: ray coordinate t computed ONCE per (angle, pixel)
    # and amortized over all P detector bins.
    t = ca * x + sa * y + kb                        # (TILE_K, TILE_PIX)
    d = t[:, None, :] - off[None, :, :]             # (TILE_K, P_pad, TILE_PIX)
    w = jnp.maximum(1.0 - jnp.abs(d), 0.0)          # exactly 0 for padded rows
    # P_pad is a multiple of 8 -> this collapse is layout-free; cast to bf16
    # for the MXU (f32 accumulation keeps full precision of the sum).
    w = w.reshape(block_q, w.shape[-1]).astype(jnp.bfloat16)

    if sino_resident:
        q0 = pl.multiple_of(ki * block_q, block_q)
        sino = sino_ref[:, pl.ds(q0, block_q)]
    else:
        sino = sino_ref[...]

    out_ref[...] += jnp.dot(sino, w, preferred_element_type=jnp.float32)


def radon_backward(sinogram, image_size, thetas=None, positions=None,
                   *, tile_pix=1024, tile_q=2048):
    """Pallas-backed back-projection.  sinogram: (B, C, K, P)."""
    B, C, K, P = sinogram.shape
    N = int(image_size)
    BC, NPIX = B * C, N * N
    in_dtype = sinogram.dtype

    if thetas is None:
        thetas = jnp.linspace(0.0, jnp.pi, K, endpoint=False, dtype=jnp.float32)
    thetas = jnp.asarray(thetas, dtype=jnp.float32)
    if positions is None:
        positions = jnp.arange(P, dtype=jnp.float32) - (P - 1) / 2.0
    positions = jnp.asarray(positions, dtype=jnp.float32)

    # TODO(synk): non-uniform `positions` would need per-bin spacing; uniform
    # detector spacing is assumed (only the first spacing is used).
    inv_dp = 1.0 / (positions[1] - positions[0]) if P > 1 else jnp.float32(1.0)

    # ---------------- tile sizes ----------------
    P_pad = _round_up(P, 8)   # keeps (TILE_K, P_pad, PIX) -> 2D collapse layout-free

    TILE_PIX = min(tile_pix, _round_up(NPIX, 128))
    # Guarantee >= 2 pixel tiles when possible so v7x's 2nd TensorCore is used.
    if _round_up(NPIX, TILE_PIX) == TILE_PIX and TILE_PIX > 128:
        TILE_PIX = max(128, _round_up(_cdiv(NPIX, 2), 128))

    if K * P_pad <= tile_q:
        TILE_K = K                        # whole contraction in one grid step
    else:
        # multiple of 16 => TILE_K*P_pad is a multiple of 128 (lane alignment)
        # and TILE_K is a multiple of 8 (sublane alignment for the geometry).
        TILE_K = max(16, (tile_q // P_pad) // 16 * 16)
    K_pad = _round_up(K, TILE_K)
    BLOCK_Q = TILE_K * P_pad
    KQ_pad = K_pad * P_pad

    # Cap the per-step W footprint (~8 MiB f32) so tiles fit v7x's 64 MiB VMEM.
    # TODO(synk): extremely wide detectors (16*P_pad >> tile_q) would want a P tile.
    w_budget = 8 * 1024 * 1024
    while BLOCK_Q * TILE_PIX * 4 > w_budget and TILE_PIX > 128:
        TILE_PIX = max(128, _round_up(TILE_PIX // 2, 128))
    NPIX_pad = _round_up(NPIX, TILE_PIX)

    BC_TILE = BC if BC <= 256 else 256    # 256 fills the v6e/v7x MXU M dimension
    BC_pad = _round_up(BC, BC_TILE)

    # Keep the sinogram resident in VMEM across pixel tiles when it is small
    # (then it is DMA'd from HBM exactly once per BC tile).
    sino_resident = BC_TILE * KQ_pad * 2 <= 4 * 1024 * 1024

    # ---------------- geometry (detector scaling folded in) ----------------
    # Padded angles get a -1e9 bias and padded detector bins a +1e9 offset so
    # their tent weights are exactly zero (robust even without zero sinogram).
    ca = jnp.pad(jnp.cos(thetas) * inv_dp, (0, K_pad - K)).reshape(K_pad, 1)
    sa = jnp.pad(jnp.sin(thetas) * inv_dp, (0, K_pad - K)).reshape(K_pad, 1)
    kb = jnp.pad(jnp.zeros((K,), jnp.float32), (0, K_pad - K),
                 constant_values=-1e9).reshape(K_pad, 1)
    off = jnp.pad(positions * inv_dp, (0, P_pad - P),
                  constant_values=1e9).reshape(P_pad, 1)

    # Flattened, centered pixel coordinates (lane-dense, padded to the tile).
    c = (N - 1) / 2.0
    xs = jnp.tile(jnp.arange(N, dtype=jnp.float32) - c, N)     # x[i*N+j] = j - c
    ys = jnp.repeat(c - jnp.arange(N, dtype=jnp.float32), N)   # y[i*N+j] = c - i
    xs = jnp.pad(xs, (0, NPIX_pad - NPIX)).reshape(1, NPIX_pad)
    ys = jnp.pad(ys, (0, NPIX_pad - NPIX)).reshape(1, NPIX_pad)

    # Sinogram as the bf16 matmul LHS, zero-padded on BC / K / P.
    sino = sinogram.astype(jnp.bfloat16).reshape(BC, K, P)
    sino = jnp.pad(sino, ((0, BC_pad - BC), (0, K_pad - K), (0, P_pad - P)))
    sino = sino.reshape(BC_pad, KQ_pad)

    grid = (BC_pad // BC_TILE, NPIX_pad // TILE_PIX, K_pad // TILE_K)

    if sino_resident:
        sino_spec = pl.BlockSpec((BC_TILE, KQ_pad), lambda bi, pi, ki: (bi, 0))
    else:
        sino_spec = pl.BlockSpec((BC_TILE, BLOCK_Q), lambda bi, pi, ki: (bi, ki))

    # Size the scoped VMEM limit from the actual blocks (v5e default is 16 MiB,
    # v7x physical is 64 MiB) instead of relying on chip defaults.
    est = (BLOCK_Q * TILE_PIX * 4 * 2                               # W (f32 + bf16)
           + BC_TILE * (KQ_pad if sino_resident else BLOCK_Q) * 2 * 2
           + BC_TILE * TILE_PIX * 4 * 2                             # out (dbl buf)
           + (2 * TILE_PIX + 3 * TILE_K + P_pad) * 4 * 2)           # geometry
    vmem_limit = int(min(64 * 1024 * 1024, max(24 * 1024 * 1024, est * 3 // 2)))

    kernel = functools.partial(_radon_backward_kernel,
                               block_q=BLOCK_Q, sino_resident=sino_resident)

    out = pl.pallas_call(
        kernel,
        out_shape=jax.ShapeDtypeStruct((BC_pad, NPIX_pad), jnp.float32),
        grid=grid,
        in_specs=[
            pl.BlockSpec((1, TILE_PIX), lambda bi, pi, ki: (0, pi)),   # xs
            pl.BlockSpec((1, TILE_PIX), lambda bi, pi, ki: (0, pi)),   # ys
            pl.BlockSpec((TILE_K, 1), lambda bi, pi, ki: (ki, 0)),     # cos/dp
            pl.BlockSpec((TILE_K, 1), lambda bi, pi, ki: (ki, 0)),     # sin/dp
            pl.BlockSpec((TILE_K, 1), lambda bi, pi, ki: (ki, 0)),     # K-pad bias
            pl.BlockSpec((P_pad, 1), lambda bi, pi, ki: (0, 0)),       # positions/dp
            sino_spec,                                                 # sinogram
        ],
        out_specs=pl.BlockSpec((BC_TILE, TILE_PIX), lambda bi, pi, ki: (bi, pi)),
        compiler_params=pltpu.CompilerParams(
            dimension_semantics=("parallel", "parallel", "arbitrary"),
            vmem_limit_bytes=vmem_limit),
    )(xs, ys, ca, sa, kb, off, sino)

    return out[:BC, :NPIX].reshape(B, C, N, N).astype(in_dtype)


class RadonBackward:
    """JAX/Pallas equivalent of the PyTorch RadonBackward module."""

    def __init__(self, image_size, thetas=None, positions=None):
        self.image_size = int(image_size)
        self.thetas = thetas
        self.positions = positions

    def __call__(self, x):
        return radon_backward(x, self.image_size, self.thetas, self.positions)


def _radon_backward_ref(sinogram, image_size, thetas=None, positions=None):
    """Pure-JAX reference with the original floor/one-hot math (correctness check)."""
    B, C, K, P = sinogram.shape
    N = int(image_size)
    if thetas is None:
        thetas = jnp.linspace(0.0, jnp.pi, K, endpoint=False, dtype=jnp.float32)
    if positions is None:
        positions = jnp.arange(P, dtype=jnp.float32) - (P - 1) / 2.0
    pos0 = positions[0]
    inv_dp = 1.0 / (positions[1] - positions[0]) if P > 1 else 1.0

    c = (N - 1) / 2.0
    j = jnp.arange(N, dtype=jnp.float32)
    x = j - c
    y = c - j
    t = x[None, :, None] * jnp.cos(thetas)[None, None, :] \
        + y[:, None, None] * jnp.sin(thetas)[None, None, :]   # (N, N, K)
    u = (t - pos0) * inv_dp
    i0 = jnp.floor(u).astype(jnp.int32)
    frac = u - jnp.floor(u)
    p = jnp.arange(P, dtype=jnp.int32)[None, None, None, :]
    w = (jnp.where(p == i0[..., None], 1.0 - frac[..., None], 0.0)
         + jnp.where(p == i0[..., None] + 1, frac[..., None], 0.0))  # (N,N,K,P)
    return jnp.einsum('ijkp,bckp->bcij', w, sinogram.astype(jnp.float32))


if __name__ == "__main__":
    B, C, K, P = 2, 4, 8, 16
    image_size = 16

    key = jax.random.PRNGKey(0)
    sinogram = jax.random.normal(key, (B, C, K, P), dtype=jnp.float32)

    module = RadonBackward(image_size)
    out = jax.block_until_ready(module(sinogram))
    assert out.shape == (B, C, image_size, image_size)

    ref = _radon_backward_ref(sinogram, image_size)
    # bf16 MXU operands (same truncation the default-precision f32 dot applies)
    # -> modest tolerance.
    assert jnp.allclose(out, ref, rtol=1e-2, atol=2e-2), "mismatch vs reference"

    print("KERNEL_OK")
</pallas_src>

<mosaic_0001>
module attributes {stable_mosaic.version = 11 : i64} {
  func.func @_radon_backward_kernel(%arg0: i32, %arg1: i32, %arg2: i32, %arg3: memref<1x128xf32, #tpu.memory_space<vmem>>, %arg4: memref<1x128xf32, #tpu.memory_space<vmem>>, %arg5: memref<8x1xf32, #tpu.memory_space<vmem>>, %arg6: memref<8x1xf32, #tpu.memory_space<vmem>>, %arg7: memref<8x1xf32, #tpu.memory_space<vmem>>, %arg8: memref<16x1xf32, #tpu.memory_space<vmem>>, %arg9: memref<8x128xbf16, #tpu.memory_space<vmem>>, %arg10: memref<8x128xf32, #tpu.memory_space<vmem>>) attributes {dimension_semantics = [#tpu.dimension_semantics<parallel>, #tpu.dimension_semantics<parallel>, #tpu.dimension_semantics<arbitrary>], iteration_bounds = array<i64: 1, 2, 1>, scalar_prefetch = 0 : i64, scratch_operands = 0 : i64, tpu.core_type = #tpu.core_type<tc>, window_params = [{transform_indices = @transform_0, window_bounds = array<i64: 1, 128>}, {transform_indices = @transform_1, window_bounds = array<i64: 1, 128>}, {transform_indices = @transform_2, window_bounds = array<i64: 8, 1>}, {transform_indices = @transform_3, window_bounds = array<i64: 8, 1>}, {transform_indices = @transform_4, window_bounds = array<i64: 8, 1>}, {pipeline_mode = #tpu.pipeline_mode<synchronous>, transform_indices = @transform_5, window_bounds = array<i64: 16, 1>}, {transform_indices = @transform_6, window_bounds = array<i64: 8, 128>}, {transform_indices = @transform_7, window_bounds = array<i64: 8, 128>}]} {
    %c0_i32 = arith.constant 0 : i32
    %0 = arith.cmpi eq, %arg2, %c0_i32 : i32
    %1 = arith.extui %0 : i1 to i32
    %c0_i32_0 = arith.constant 0 : i32
    %2 = arith.cmpi ne, %1, %c0_i32_0 : i32
    scf.if %2 {
      %cst_19 = arith.constant 0.000000e+00 : f32
      %38 = vector.broadcast %cst_19 : f32 to vector<8x128xf32>
      %c0_20 = arith.constant 0 : index
      %c0_21 = arith.constant 0 : index
      %39 = vector.load %arg10[%c0_20, %c0_21] : memref<8x128xf32, #tpu.memory_space<vmem>>, vector<8x128xf32>
      tpu.vector_store %arg10[%c0_20, %c0_21], %38 {strides = array<i32>} : memref<8x128xf32, #tpu.memory_space<vmem>>, vector<8x128xf32>,
    } else {
    }
    %c0 = arith.constant 0 : index
    %c0_1 = arith.constant 0 : index
    %3 = vector.load %arg3[%c0, %c0_1] : memref<1x128xf32, #tpu.memory_space<vmem>>, vector<1x128xf32>
    %c0_2 = arith.constant 0 : index
    %c0_3 = arith.constant 0 : index
    %4 = vector.load %arg4[%c0_2, %c0_3] : memref<1x128xf32, #tpu.memory_space<vmem>>, vector<1x128xf32>
    %c0_4 = arith.constant 0 : index
    %c0_5 = arith.constant 0 : index
    %5 = vector.load %arg5[%c0_4, %c0_5] : memref<8x1xf32, #tpu.memory_space<vmem>>, vector<8x1xf32>
    %c0_6 = arith.constant 0 : index
    %c0_7 = arith.constant 0 : index
    %6 = vector.load %arg6[%c0_6, %c0_7] : memref<8x1xf32, #tpu.memory_space<vmem>>, vector<8x1xf32>
    %c0_8 = arith.constant 0 : index
    %c0_9 = arith.constant 0 : index
    %7 = vector.load %arg7[%c0_8, %c0_9] : memref<8x1xf32, #tpu.memory_space<vmem>>, vector<8x1xf32>
    %c0_10 = arith.constant 0 : index
    %c0_11 = arith.constant 0 : index
    %8 = vector.load %arg8[%c0_10, %c0_11] : memref<16x1xf32, #tpu.memory_space<vmem>>, vector<16x1xf32>
    %9 = vector.broadcast %5 : vector<8x1xf32> to vector<8x128xf32>
    %10 = vector.broadcast %3 : vector<1x128xf32> to vector<8x128xf32>
    %11 = arith.mulf %9, %10 : vector<8x128xf32>
    %12 = vector.broadcast %6 : vector<8x1xf32> to vector<8x128xf32>
    %13 = vector.broadcast %4 : vector<1x128xf32> to vector<8x128xf32>
    %14 = arith.mulf %12, %13 : vector<8x128xf32>
    %15 = arith.addf %11, %14 : vector<8x128xf32>
    %16 = vector.broadcast %7 : vector<8x1xf32> to vector<8x128xf32>
    %17 = arith.addf %15, %16 : vector<8x128xf32>
    %18 = vector.shape_cast %17 : vector<8x128xf32> to vector<8x1x128xf32>
    %19 = vector.shape_cast %8 : vector<16x1xf32> to vector<1x16x1xf32>
    %20 = vector.broadcast %18 : vector<8x1x128xf32> to vector<8x16x128xf32>
    %21 = vector.broadcast %19 : vector<1x16x1xf32> to vector<8x16x128xf32>
    %22 = arith.subf %20, %21 : vector<8x16x128xf32>
    %23 = math.absf %22 : vector<8x16x128xf32>
    %cst = arith.constant 1.000000e+00 : f32
    %24 = vector.broadcast %cst : f32 to vector<8x16x128xf32>
    %25 = arith.subf %24, %23 : vector<8x16x128xf32>
    %cst_12 = arith.constant 0.000000e+00 : f32
    %26 = vector.broadcast %cst_12 : f32 to vector<8x16x128xf32>
    %27 = arith.maximumf %25, %26 : vector<8x16x128xf32>
    %28 = vector.shape_cast %27 : vector<8x16x128xf32> to vector<128x128xf32>
    %29 = arith.truncf %28 : vector<128x128xf32> to vector<128x128xbf16>
    %c128_i32 = arith.constant 128 : i32
    %30 = arith.muli %arg2, %c128_i32 : i32
    %31 = tpu.assume_multiple %30, 128 : i32
    %c0_13 = arith.constant 0 : index
    %32 = arith.index_cast %31 : i32 to index
    %33 = vector.load %arg9[%c0_13, %32] : memref<8x128xbf16, #tpu.memory_space<vmem>>, vector<8x128xbf16>
    %c0_14 = arith.constant 0 : index
    %c0_15 = arith.constant 0 : index
    %34 = vector.load %arg10[%c0_14, %c0_15] : memref<8x128xf32, #tpu.memory_space<vmem>>, vector<8x128xf32>
    %cst_16 = arith.constant dense<0.000000e+00> : vector<8x128xf32>
    %35 = tpu.matmul %33, %29, %cst_16 {dimension_numbers = #tpu.dot_dimension_numbers<[1], [0], [0], [1], [0, 0, 1, 1], [], []>} : vector<8x128xbf16>, vector<128x128xbf16>, vector<8x128xf32> -> vector<8x128xf32>
    %36 = arith.addf %34, %35 : vector<8x128xf32>
    %c0_17 = arith.constant 0 : index
    %c0_18 = arith.constant 0 : index
    %37 = vector.load %arg10[%c0_17, %c0_18] : memref<8x128xf32, #tpu.memory_space<vmem>>, vector<8x128xf32>
    tpu.vector_store %arg10[%c0_17, %c0_18], %36 {strides = array<i32>} : memref<8x128xf32, #tpu.memory_space<vmem>>, vector<8x128xf32>,
    return
  }
  func.func @transform_0(%arg0: i32, %arg1: i32, %arg2: i32) -> (i32, i32) {
    %c0_i32 = arith.constant 0 : i32
    %c0_i32_0 = arith.constant 0 : i32
    return %c0_i32, %arg1 : i32, i32
  }
  func.func @transform_1(%arg0: i32, %arg1: i32, %arg2: i32) -> (i32, i32) {
    %c0_i32 = arith.constant 0 : i32
    %c0_i32_0 = arith.constant 0 : i32
    return %c0_i32, %arg1 : i32, i32
  }
  func.func @transform_2(%arg0: i32, %arg1: i32, %arg2: i32) -> (i32, i32) {
    %c0_i32 = arith.constant 0 : i32
    %c0_i32_0 = arith.constant 0 : i32
    return %arg2, %c0_i32 : i32, i32
  }
  func.func @transform_3(%arg0: i32, %arg1: i32, %arg2: i32) -> (i32, i32) {
    %c0_i32 = arith.constant 0 : i32
    %c0_i32_0 = arith.constant 0 : i32
    return %arg2, %c0_i32 : i32, i32
  }
  func.func @transform_4(%arg0: i32, %arg1: i32, %arg2: i32) -> (i32, i32) {
    %c0_i32 = arith.constant 0 : i32
    %c0_i32_0 = arith.constant 0 : i32
    return %arg2, %c0_i32 : i32, i32
  }
  func.func @transform_5(%arg0: i32, %arg1: i32, %arg2: i32) -> (i32, i32) {
    %c0_i32 = arith.constant 0 : i32
    %c0_i32_0 = arith.constant 0 : i32
    %c0_i32_1 = arith.constant 0 : i32
    return %c0_i32, %c0_i32_0 : i32, i32
  }
  func.func @transform_6(%arg0: i32, %arg1: i32, %arg2: i32) -> (i32, i32) {
    %c0_i32 = arith.constant 0 : i32
    %c0_i32_0 = arith.constant 0 : i32
    return %arg0, %c0_i32 : i32, i32
  }
  func.func @transform_7(%arg0: i32, %arg1: i32, %arg2: i32) -> (i32, i32) {
    %c0_i32 = arith.constant 0 : i32
    return %arg0, %arg1 : i32, i32
  }
}

</mosaic_0001>

<bundles_post_ra>
// kernel: tpu_custom_call.1
= control target key start
LH: loop header
LB: loop body
LE: loop exit
PB: predicated region body
PF: predicated region fallthrough
CT: control target
= control target key end

     0   :  { %12 = vsyncpa [#allocation3], 0  ;;  %s1198_s0 = inlined_call_operand.vmem [shape: f32[1,256], index: 0, kind: input, shape index: {}]   ;;  %s1199_s1 = inlined_call_operand.vmem [shape: f32[1,256], index: 1, kind: input, shape index: {}]   ;;  %s1200_s2 = inlined_call_operand.vmem [shape: f32[8,1], index: 2, kind: input, shape index: {}]   ;;  %s1201_s3 = inlined_call_operand.vmem [shape: f32[8,1], index: 3, kind: input, shape index: {}]   ;;  %s1202_s4 = inlined_call_operand.vmem [shape: f32[8,1], index: 4, kind: input, shape index: {}]   ;;  %s1203_s5 = inlined_call_operand.vmem [shape: f32[16,1], index: 5, kind: input, shape index: {}]   ;;  %s1204_s6 = inlined_call_operand.vmem [shape: bf16[8,128], index: 6, kind: input, shape index: {}]   ;;  %s1205_s7 = inlined_call_operand.hbm [shape: f32[8,256], index: 7, kind: output, shape index: {}]  }
   0x1   :  { %14 = vsyncpa [#allocation3 + $0x1], 0  ;;  %s1026_s24 = smov 0   ;;  %s1028_s25 = smov 0  }
   0x2   :  { %s1030_s26 = smov 0   ;;  %s1032_s27 = smov 0  }
   0x3   :  { %s1034_s28 = smov 0   ;;  %s1036_s29 = smov 0  }
   0x4 LB: > { %s795_s30 = sadd.s32 4294967295, %s979_s29   ;;  %s796_s8 = sadd.s32 4294967294, %s979_s29   ;;  %s979_s29 = sphi %s1036_s29, %s20_s29   ;;  %s975_s28 = sphi %s1034_s28, %s1212_s28   ;;  %s971_s27 = sphi %s1032_s27, %s1211_s27   ;;  %s967_s26 = sphi %s1030_s26, %s1210_s26   ;;  %s963_s25 = sphi %s1028_s25, %s1209_s25   ;;  %s959_s24 = sphi %s1026_s24, %s1208_s24  }
   0x5   : > { %s35_s9 = sadd.s32 1, %s975_s28  ;;  %s225_s10 = sadd.s32 1, %s967_s26 }
   0x6   : > { %p37_p0 = scmp.ge.s32.totalorder %s35_s9, 2  ;;  %p235_p1 = scmp.ne.s32.totalorder %s967_s26, %s963_s25 }
   0x7   : > { %p236_p2 = scmp.eq.s32.totalorder %s795_s30, 1  ;;  %p241_p3 = scmp.ne.s32.totalorder %s963_s25, %s959_s24 }
   0x8   : > { %s1214_s9 = smov (%p37_p0, %s35_s9), 0  ;;  %p242_p5 = scmp.eq.s32.totalorder %s796_s8, 1 }
   0x9   : > { %p1066_p4 = por %p236_p2, %p235_p1  ;;  %s221_s12 = ssub.s32 %s975_s28, %s1214_s9 }
   0xa   : > { %p803_p6 = scmp.ge.s32.totalorder %s979_s29, 1  ;;  %p223_p7 = scmp.eq.s32.totalorder %s221_s12, 0 }
   0xb   : > { %p1073_p8 = por %p242_p5, %p241_p3  ;;  %p303_p9 = scmp.lt.s32.totalorder %s979_s29, 3 }
   0xc   : > { %s1079_s14 = scalar_select %p223_p7, %s967_s26, %s225_s10  }
   0xd   : > { %p304_p10 = pnand %p803_p6, %p303_p9 }
   0xe   : > { %v382_v0 = vld [vmem:[%s1200_s2] sm:$0xff] (!%p304_p10)  ;;  %v981_v2 = vmov (!%p304_p10), 0   ;;  %v386_v5 = vld [vmem:[%s1203_s5 + $0x8] sm:$0xff] (!%p304_p10)  ;;  %v982_v6 = vmov (!%p304_p10), 0.0   ;;  %vm983_vm0 = vmmov (!%p304_p10), 0   ;;  %p352_p11 = scmp.lt.s32.totalorder (!%p304_p10), %s971_s27, 1  ;;  %v423_v9 = vlaneseq (!%p304_p10) }
   0xf   : > { %307 = sbr.rel (%p304_p10) target bundleno = 430 (0x1ae), region = 48  ;;  %v384_v1 = vld [vmem:[%s1202_s4] sm:$0xff] (!%p304_p10)  ;;  %899 = vset.pattern.permute.xlu0 (!%p304_p10), %v981_v2  ;;  %900 = vset.pattern.permute.xlu1 (!%p304_p10), %v981_v2  ;;  %v984_v7 = vmov (!%p304_p10), 1966171168   ;;  %s349_s21 = sand.u32 (!%p304_p10), 1, %s963_s25  }
  0x10   : > { %389 = vperm.xlu0 (!%p304_p10), %899, %v382_v0   ;;  %414 = vperm.xlu1 (!%p304_p10), %900, %v384_v1   ;;  %v383_v3 = vld [vmem:[%s1201_s3] sm:$0xff] (!%p304_p10)  ;;  %v421_v8 = vunpack.c.l.s4 (!%p304_p10), %v984_v7  ;;  %v424_v14 = vshrl.u32 (!%p304_p10), %v423_v9, 7  ;;  %s804_s22 = sshll.u32 (!%p304_p10), %s349_s21, 3  ;;  %s808_s23 = sshll.u32 (!%p304_p10), %s971_s27, 7 }
  0x11   : > { %v385_v4 = vld [vmem:[%s1203_s5] sm:$0xff] (!%p304_p10)  ;;  %820 = vmatprep.subr.bf16.mxu0 (!%p304_p10), %v982_v6  ;;  %836 = vmatprep.mubr.msk.bf16.mxu0 (!%p304_p10), %vm983_vm0, %v982_v6  ;;  %s351_s30 = scalar_lea.vmem (!%p304_p10), [#allocation2], %s804_s22  ;;  %s640_s16 = scalar_lea.sflag (!%p304_p10), [#allocation3], %s349_s21 }
  0x12   : > { %v422_v13 = vunpack.c.0.s8 (!%p304_p10), %v421_v8  ;;  %v1106_v24 = vsub.s32 (!%p304_p10), 0, %v424_v14 }
  0x14   : > { %401 = vperm.xlu0 (!%p304_p10), %899, %v383_v3   ;;  %510 = vperm.xlu1 (!%p304_p10), %900, %v385_v4   ;;  %v425_v18 = vsub.s32 (!%p304_p10), %v422_v13, %v424_v14 }
  0x16   : > { %s353_s8 = scalar_select %p352_p11, %s971_s27, 1 }
  0x17   : > { %s985_s27 = smov [#allocation2]  }
  0x18   : > { %515 = vperm.xlu0 %899, %v386_v5   ;;  %s354_s15 = scalar_lea.vmem %s1198_s0, %s353_s8  ;;  %s357_s18 = scalar_lea.vmem %s1199_s1, %s353_s8 }
  0x19   : > { %v805_v11 = vld [vmem:[%s354_s15] ss:$0 sm:$0xff]  ;;  %s655_s8 = sshll.u32 %s351_s30, 4  ;;  %s1151_s15 = scalar_lea.hbm %s1205_s7, %s808_s23  ;;  %s1153_s8 = int_to_ptr.vmem [resolvable:$true] %s655_s8 }
  0x1a   : > { %v806_v12 = vld [vmem:[%s357_s18] ss:$0 sm:$0xff]  ;;  %s901_s17 = scalar_lea.vmem %s1153_s8, 128  ;;  %s905_s18 = sshll.u32 %s985_s27, 4  ;;  %s906_s18 = int_to_ptr.vmem [resolvable:$false] %s905_s18 }
  0x1b   : > { %p902_p12 = scmp.ne.s32.totalorder %s1153_s8, %s901_s17  ;;  %s907_s19 = scalar_lea.vmem %s906_s18, 256 }
  0x1c   : > { %p908_p1 = scmp.lt.s32.totalorder %s1153_s8, %s906_s18  ;;  %p909_p2 = scmp.lt.s32.totalorder %s907_s19, %s901_s17 }
  0x1d   : > { %p903_p13 = pnand %p902_p12, %p1066_p4 }
  0x1e   : > { %p910_p3 = por %p909_p2, %p908_p1 }
  0x1f   : > { %p904_p0 = pneg %p903_p13 }
  0x21   : > { %p911_p5 = pnand %p910_p3, %p904_p0 }
  0x8f   : > { %v390_v10 = vpop.permute.xlu0 %389  ;;  %v415_v20 = vpop.permute.xlu1 %414 }
  0x90   : > { %v398_v16 = vmul.f32 %v805_v11, %v390_v10 }
  0x93   : > { %v402_v15 = vpop.permute.xlu0 %401  ;;  %v1109_v33 = vpop.permute.xlu1 %510 }
  0x94   : > { %v410_v17 = vmul.f32 %v806_v12, %v402_v15 }
  0x96   : > { %v411_v19 = vadd.f32 %v410_v17, %v398_v16 }
  0x97   : > { %v1111_v34 = vpop.permute.xlu0 %515 }
  0x98   : > { %v417_v21 = vadd.f32 %v415_v20, %v411_v19 }
  0x9a   : > { %v419_v22 = vcombine.high %v417_v21, %v417_v21  ;;  %v426_v23 = vrot.slane %v417_v21, %v425_v18 }
  0x9c   : > { %v433_v25 = vrot.slane %v419_v22, %v425_v18  ;;  %v434_v26 = vcombine.high %v426_v23, %v426_v23  ;;  %v442_v27 = vrot.slane %v426_v23, %v425_v18 }
  0x9e   : > { %v449_v28 = vrot.slane %v433_v25, %v425_v18  ;;  %v456_v29 = vrot.slane %v434_v26, %v425_v18  ;;  %v464_v30 = vcombine.high %v442_v27, %v442_v27  ;;  %v471_v31 = vrot.slane %v442_v27, %v1106_v24 }
  0x9f   : > { %v435_v32 = vcombine.high %v433_v25, %v433_v25 }
  0xa0   : > { %v475_v35 = vrot.slane %v456_v29, %v1106_v24  ;;  %v479_v36 = vrot.slane %v464_v30, %v1106_v24  ;;  %v466_v37 = vcombine.high %v456_v29, %v456_v29  ;;  %v518_v38 = vsub.f32 %v471_v31, %v1109_v33 }
  0xa1   : > { %v519_v39 = vsub.f32 %v471_v31, %v1111_v34  ;;  %v487_v40 = vrot.slane %v449_v28, %v1106_v24  ;;  %v463_v51 = vrot.slane %v435_v32, %v425_v18  ;;  %v465_v3 = vcombine.high %v449_v28, %v449_v28 }
  0xa2   : > { %v520_v41 = vsub.f32 %v475_v35, %v1109_v33  ;;  %v521_v42 = vsub.f32 %v475_v35, %v1111_v34  ;;  %v522_v43 = vsub.f32 %v479_v36, %v1109_v33  ;;  %v523_v44 = vsub.f32 %v479_v36, %v1111_v34 }
  0xa3   : > { %v534_v45 = vand.u32 2147483647, %v518_v38  ;;  %v535_v46 = vand.u32 2147483647, %v519_v39  ;;  %v483_v47 = vrot.slane %v466_v37, %v1106_v24  ;;  %v526_v59 = vsub.f32 %v487_v40, %v1109_v33 }
  0xa4   : > { %v536_v48 = vand.u32 2147483647, %v520_v41  ;;  %v537_v49 = vand.u32 2147483647, %v521_v42  ;;  %v538_v50 = vand.u32 2147483647, %v522_v43  ;;  %v527_v2 = vsub.f32 %v487_v40, %v1111_v34 }
  0xa5   : > { %v550_v52 = vsub.f32 1.0, %v534_v45  ;;  %v551_v53 = vsub.f32 1.0, %v535_v46  ;;  %v539_v54 = vand.u32 2147483647, %v523_v44  ;;  %v524_v55 = vsub.f32 %v483_v47, %v1109_v33 }
  0xa6   : > { %v552_v56 = vsub.f32 1.0, %v536_v48  ;;  %v553_v57 = vsub.f32 1.0, %v537_v49  ;;  %v525_v58 = vsub.f32 %v483_v47, %v1111_v34  ;;  %v554_v62 = vsub.f32 1.0, %v538_v50 }
  0xa7   : > { %v566_v60 = vmax.f32 %v550_v52, 0.0  ;;  %v567_v61 = vmax.f32 %v551_v53, 0.0  ;;  %v540_v63 = vand.u32 2147483647, %v524_v55  ;;  %v555_v0 = vsub.f32 1.0, %v539_v54 }
  0xa8   : > { %v541_v1 = vand.u32 2147483647, %v525_v58  ;;  %v568_v5 = vmax.f32 %v552_v56, 0.0  ;;  %v569_v7 = vmax.f32 %v553_v57, 0.0  ;;  %v491_v8 = vrot.slane %v463_v51, %v1106_v24  ;;  %v595_v55 = vld [vmem:[%s1204_s6] sm:$0xf] }
  0xa9   : > { %v582_v4 = vpack.c.bf16 %v567_v61, %v566_v60  ;;  %v570_v9 = vmax.f32 %v554_v62, 0.0  ;;  %v556_v10 = vsub.f32 1.0, %v540_v63  ;;  %v542_v11 = vand.u32 2147483647, %v526_v59 }
  0xaa   : > { %v571_v12 = vmax.f32 %v555_v0, 0.0  ;;  %v557_v13 = vsub.f32 1.0, %v541_v1  ;;  %v543_v14 = vand.u32 2147483647, %v527_v2  ;;  %v495_v15 = vrot.slane %v465_v3, %v1106_v24 }
  0xab   : > { %821 = vmatpush3.bf16.msra.mxu0 %v582_v4  ;;  %v583_v16 = vpack.c.bf16 %v569_v7, %v568_v5  ;;  %v528_v17 = vsub.f32 %v491_v8, %v1109_v33  ;;  %v529_v18 = vsub.f32 %v491_v8, %v1111_v34  ;;  %v467_v19 = vcombine.high %v463_v51, %v463_v51 }
  0xac   : > { %822 = vmatprep.subr.bf16.mxu0 %v982_v6  ;;  %v572_v20 = vmax.f32 %v556_v10, 0.0  ;;  %v558_v21 = vsub.f32 1.0, %v542_v11  ;;  %v573_v22 = vmax.f32 %v557_v13, 0.0  ;;  %v559_v23 = vsub.f32 1.0, %v543_v14 }
  0xad   : > { %v530_v25 = vsub.f32 %v495_v15, %v1109_v33  ;;  %v531_v26 = vsub.f32 %v495_v15, %v1111_v34  ;;  %v584_v27 = vpack.c.bf16 %v571_v12, %v570_v9  ;;  %v544_v28 = vand.u32 2147483647, %v528_v17 }
  0xae   : > { %v545_v29 = vand.u32 2147483647, %v529_v18  ;;  %v499_v30 = vrot.slane %v467_v19, %v1106_v24  ;;  %v574_v31 = vmax.f32 %v558_v21, 0.0  ;;  %v585_v32 = vpack.c.bf16 %v573_v22, %v572_v20 }
  0xaf   : > { %823 = vmatpush3.bf16.msra.mxu0 %v583_v16  ;;  %v575_v35 = vmax.f32 %v559_v23, 0.0  ;;  %v546_v36 = vand.u32 2147483647, %v530_v25  ;;  %v547_v37 = vand.u32 2147483647, %v531_v26  ;;  %v560_v38 = vsub.f32 1.0, %v544_v28 }
  0xb0   : > { %824 = vmatprep.subr.bf16.mxu0 %v982_v6  ;;  %v561_v39 = vsub.f32 1.0, %v545_v29  ;;  %v532_v40 = vsub.f32 %v499_v30, %v1109_v33  ;;  %v533_v41 = vsub.f32 %v499_v30, %v1111_v34 }
  0xb1   : > { %v586_v42 = vpack.c.bf16 %v575_v35, %v574_v31  ;;  %v562_v43 = vsub.f32 1.0, %v546_v36  ;;  %v563_v24 = vsub.f32 1.0, %v547_v37  ;;  %v576_v44 = vmax.f32 %v560_v38, 0.0 }
  0xb2   : > { %v577_v45 = vmax.f32 %v561_v39, 0.0  ;;  %v548_v46 = vand.u32 2147483647, %v532_v40  ;;  %v549_v47 = vand.u32 2147483647, %v533_v41 }
  0xb3   : > { %825 = vmatpush3.bf16.msra.mxu0 %v584_v27  ;;  %v578_v48 = vmax.f32 %v562_v43, 0.0  ;;  %v579_v50 = vmax.f32 %v563_v24, 0.0 }
  0xb4   : > { %826 = vmatprep.subr.bf16.mxu0 %v982_v6  ;;  %v587_v49 = vpack.c.bf16 %v577_v45, %v576_v44  ;;  %v564_v33 = vsub.f32 1.0, %v548_v46  ;;  %v565_v34 = vsub.f32 1.0, %v549_v47 }
  0xb5   : > { %v588_v51 = vpack.c.bf16 %v579_v50, %v578_v48 }
  0xb6   : > { %v580_v52 = vmax.f32 %v564_v33, 0.0  ;;  %v581_v53 = vmax.f32 %v565_v34, 0.0 }
  0xb7   : > { %827 = vmatpush3.bf16.msra.mxu0 %v585_v32 }
  0xb8   : > { %828 = vmatprep.subr.bf16.mxu0 %v982_v6  ;;  %v589_v54 = vpack.c.bf16 %v581_v53, %v580_v52 }
  0xbb   : > { %829 = vmatpush3.bf16.msra.mxu0 %v586_v42 }
  0xbc   : > { %830 = vmatprep.subr.bf16.mxu0 %v982_v6 }
  0xbf   : > { %831 = vmatpush3.bf16.msra.mxu0 %v587_v49 }
  0xc0   : > { %832 = vmatprep.subr.bf16.mxu0 %v982_v6 }
  0xc3   : > { %833 = vmatpush3.bf16.msra.mxu0 %v588_v51 }
  0xc4   : > { %834 = vmatprep.subr.bf16.mxu0 %v982_v6 }
  0xc7   : > { %835 = vmatpush3.bf16.msra.mxu0 %v589_v54 }
  0xca   : > { %837 = vmatmul.mubr.bf16.vlgmr.msra.gmra.mrb[0].mxu0 %v595_v55 }
 0x19d   : > { %v631_v56 = vpop.f32.mrb[0].mxu0 }
 0x19e   : > { %v838_v57 = vpop.f32.mrb[1].mxu0  ;;  %638 = vst [vmem:[%s351_s30] sm:$0xff] %v631_v56 }
 0x19f   : > { %v634_v6 = vpop.f32.mrb[2].mxu0 }
 0x1a0   : > { %v839_v58 = vpop.f32.mrb[3].mxu0 }
 0x1a1   : > { %914 = shalt.err (!%p911_p5)
}
 0x1a2   : > { %s915_s20 = scalar_lea.hbm %s1151_s15, 128  ;;  %s919_s23 = scalar_lea.hbm %s1205_s7, 256 }
 0x1a3   : > { %p916_p6 = scmp.ne.s32.totalorder %s1151_s15, %s915_s20  ;;  %p920_p10 = scmp.lt.u32.totalorder %s1151_s15, %s1205_s7 }
 0x1a4   : > { %p921_p11 = scmp.lt.u32.totalorder %s919_s23, %s915_s20  ;;  %p923_p13 = scmp.lt.u32.totalorder %s915_s20, %s1151_s15 }
 0x1a5   : > { %p917_p7 = pnand %p916_p6, %p1066_p4 }
 0x1a6   : > { %p922_p12 = por %p921_p11, %p920_p10 }
 0x1a7   : > { %p918_p9 = pneg %p917_p7 }
 0x1a8   : > { %p924_p0 = por %p923_p13, %p922_p12 }
 0x1aa   : > { %p925_p1 = pnand %p924_p0, %p918_p9 }
 0x1ac   : > { %928 = shalt.err (!%p925_p1)
}
 0x1ad   : > { %840 = dma.vmem_to_hbm [thread:$0]  (%p1066_p4), %s1153_s8, 128, %s1151_s15, %s640_s16  }
 0x1ae PF: > { %p846_p2 = scmp.ge.s32.totalorder %s979_s29, 2  ;;  %s667_s12 = sand.u32 1, %s959_s24  }
 0x1af   : > { %s668_s17 = scalar_lea.sflag [#allocation3], %s667_s12 }
 0x1b0   : > { %p843_p3 = pnand %p846_p2, %p1073_p8 }
 0x1b2   : > { %954 = dma.done.wait (!%p843_p3), %s668_s17, 128  }
 0x1b3   : > { %956 = vsyncadd (!%p843_p3), %s668_s17, 4294967168  ;;  %s20_s29 = sadd.s32 1, %s979_s29   ;;  %s1208_s24 = smov %s963_s25 }
 0x1b4   : > { %p17_p5 = scmp.ge.s32.totalorder %s20_s29, 4   ;;  %s1209_s25 = smov %s967_s26 }
 0x1b5   : > { %s1210_s26 = smov %s1079_s14  ;;  %s1211_s27 = smov %s975_s28 }
 0x1b6   : > { %s1212_s28 = smov %s1214_s9  ;;  %19 = sbr.rel (!%p17_p5) target bundleno = 4 (0x4), region = 103 }
 0x1bd   :  { %673 = vsyncpa [#allocation3], 1 }
 0x1be   :  { %675 = vsyncpa [#allocation3 + $0x1], 1 }

</bundles_post_ra>
